<compile_context>
chip_gen: v7x
topology: tpu7x:2x2x1
jax: 0.10.0
libtpu: 0.0.40
codegen_flags: <defaults>
</compile_context>

<pallas_src>
import functools

import jax
import jax.numpy as jnp
from jax import lax
from jax.experimental import pallas as pl
from jax.experimental.pallas import tpu as pltpu


_VMEM_BUDGET = 48 * 1024 * 1024  # conservative: fits v7x's 64 MiB/TC physical VMEM


def _round_up(x, m):
    return ((x + m - 1) // m) * m


def _pick_tk(M, N, itemsize, resident_bytes, max_tk):
    """Largest lane-aligned (multiple-of-128) contraction tile such that the
    double-buffered (M, tk) F tile plus the resident (M, M) f32 blocks stay
    inside a conservative VMEM budget. If the tile covers all of N, use tk = N
    (single step, no masking; a full-extent last dim is always a legal block)."""
    avail = max(_VMEM_BUDGET - resident_bytes, 2 * M * 128 * itemsize)
    cap = max(128, (avail // (2 * M * itemsize)) // 128 * 128)
    tk = min(max_tk, cap, _round_up(N, 128))
    if tk >= N:
        tk = N
    return tk


def _prep_features(x, max_tk, n_resident_mm_blocks):
    a, b, c, d = x.shape
    M, N = a * b, c * d
    # Keep bf16 streams bf16 (MXU is bf16-native); other dtypes go to f32.
    dt = x.dtype if x.dtype in (jnp.bfloat16, jnp.float32) else jnp.float32
    features = x.reshape(M, N).astype(dt)
    itemsize = features.dtype.itemsize
    resident = n_resident_mm_blocks * M * M * 4  # resident f32 (M,M) blocks
    tk = _pick_tk(M, N, itemsize, resident, max_tk)
    ksteps = pl.cdiv(N, tk)
    vmem_limit = int(
        min(max(resident + 2 * M * tk * itemsize + (4 << 20), 16 << 20), 96 << 20)
    )
    inv_div = 1.0 / float(a * b * c * d)
    return features, M, N, tk, ksteps, inv_div, vmem_limit


def _masked_tile(f_ref, n_total, tk):
    """Load the current (M, tk) tile; zero lanes past the true contraction
    length on the (ragged) last K step. Statically a no-op when tk divides N."""
    f = f_ref[...]
    rem = n_total % tk
    if rem != 0:
        is_last = pl.program_id(0) == pl.num_programs(0) - 1
        col = lax.broadcasted_iota(jnp.int32, f.shape, 1)
        keep = jnp.logical_or(jnp.logical_not(is_last), col < rem)
        f = jnp.where(keep, f, jnp.zeros_like(f))
    return f


# ---------------------------------------------------------------------------
# Kernel 1: Gram matrix only (used once, for the detached target).
#   G = sum_k F[:, k-tile] . F[:, k-tile]^T  (transpose-free contraction),
#   accumulated into the resident output block; scaled in the epilogue.
# ---------------------------------------------------------------------------
def _gram_kernel(f_ref, g_ref, *, inv_divisor, n_total, tk):
    k = pl.program_id(0)

    @pl.when(k == 0)
    def _():
        g_ref[...] = jnp.zeros_like(g_ref)

    f = _masked_tile(f_ref, n_total, tk)
    g_ref[...] += lax.dot_general(
        f, f,
        dimension_numbers=(((1,), (1,)), ((), ())),
        preferred_element_type=jnp.float32,
    )

    @pl.when(k == pl.num_programs(0) - 1)
    def _():
        g_ref[...] = g_ref[...] * inv_divisor


# ---------------------------------------------------------------------------
# Kernel 2: loss-only Gram + fused MSE against a constant target gram.
#   The Gram accumulator is a VMEM scratch (never written back to HBM);
#   the last grid step folds the 1/divisor scale into the diff and writes
#   a single (1,1) SMEM loss.
# ---------------------------------------------------------------------------
def _style_loss_kernel(f_ref, t_ref, loss_ref, acc_ref, *,
                       inv_divisor, inv_nelems, n_total, tk):
    k = pl.program_id(0)

    @pl.when(k == 0)
    def _():
        acc_ref[...] = jnp.zeros_like(acc_ref)
        loss_ref[0, 0] = jnp.float32(0.0)

    f = _masked_tile(f_ref, n_total, tk)
    acc_ref[...] += lax.dot_general(
        f, f,
        dimension_numbers=(((1,), (1,)), ((), ())),
        preferred_element_type=jnp.float32,
    )

    @pl.when(k == pl.num_programs(0) - 1)
    def _():
        diff = acc_ref[...] * inv_divisor - t_ref[...]
        loss_ref[0, 0] = jnp.sum(diff * diff) * inv_nelems


# ---------------------------------------------------------------------------
# Wrappers
# ---------------------------------------------------------------------------
def gram_matrix(x, *, max_tk=1024):
    """x: (a, b, c, d) NCHW. Returns the (a*b, a*b) float32 Gram matrix."""
    features, M, N, tk, ksteps, inv_div, vmem_limit = _prep_features(
        x, max_tk, n_resident_mm_blocks=2)  # (M,M) output, budget 2 buffers
    kernel = functools.partial(_gram_kernel, inv_divisor=inv_div, n_total=N, tk=tk)
    return pl.pallas_call(
        kernel,
        out_shape=jax.ShapeDtypeStruct((M, M), jnp.float32),
        grid_spec=pltpu.PrefetchScalarGridSpec(
            num_scalar_prefetch=0,
            grid=(ksteps,),
            in_specs=[pl.BlockSpec((M, tk), lambda k: (0, k))],
            out_specs=pl.BlockSpec((M, M), lambda k: (0, 0)),
        ),
        compiler_params=pltpu.CompilerParams(
            dimension_semantics=("arbitrary",),
            vmem_limit_bytes=vmem_limit,
        ),
    )(features)


def style_loss(x, target_gram, *, max_tk=1024):
    """loss = mean((gram_matrix(x) - target_gram)^2); the Gram matrix stays in
    VMEM scratch (no M^2 HBM writeback)."""
    features, M, N, tk, ksteps, inv_div, vmem_limit = _prep_features(
        x, max_tk, n_resident_mm_blocks=2)  # VMEM acc scratch + 1-buffered target
    kernel = functools.partial(
        _style_loss_kernel,
        inv_divisor=inv_div,
        inv_nelems=1.0 / float(M * M),
        n_total=N,
        tk=tk,
    )
    loss = pl.pallas_call(
        kernel,
        out_shape=jax.ShapeDtypeStruct((1, 1), jnp.float32),
        grid_spec=pltpu.PrefetchScalarGridSpec(
            num_scalar_prefetch=0,
            grid=(ksteps,),
            in_specs=[
                pl.BlockSpec((M, tk), lambda k: (0, k)),
                # Constant target gram: fetched once, read only in the epilogue;
                # single-buffer it to halve its VMEM footprint.
                pl.BlockSpec((M, M), lambda k: (0, 0), pipeline_mode=pl.Buffered(1)),
            ],
            out_specs=pl.BlockSpec(memory_space=pltpu.MemorySpace.SMEM),
            scratch_shapes=[pltpu.VMEM((M, M), jnp.float32)],
        ),
        compiler_params=pltpu.CompilerParams(
            dimension_semantics=("arbitrary",),
            vmem_limit_bytes=vmem_limit,
        ),
    )(features, target_gram.astype(jnp.float32))
    return loss.reshape(())


# ---------------------------------------------------------------------------
# StyleLoss module (forward pass)
# ---------------------------------------------------------------------------
class StyleLoss:
    def __init__(self, target_feature):
        # target is a constant (detached) gram matrix of the style feature map.
        self.target = jax.block_until_ready(gram_matrix(target_feature))
        self.loss = None

    def __call__(self, x):
        self.loss = style_loss(x, self.target)
        return x  # pass-through, just like the PyTorch module


if __name__ == "__main__":
    key = jax.random.PRNGKey(0)
    k_tgt, k_in = jax.random.split(key)

    # Small NCHW shapes consistent with a conv feature map.
    a, b, c, d = 2, 4, 16, 16
    target_feature = jax.random.normal(k_tgt, (a, b, c, d), dtype=jnp.float32)
    x = jax.random.normal(k_in, (a, b, c, d), dtype=jnp.float32)

    module = StyleLoss(target_feature)
    out = module(x)
    out = jax.block_until_ready(out)
    loss = jax.block_until_ready(module.loss)

    # Reference check in plain JAX (same math as the PyTorch module).
    feats = x.reshape(a * b, c * d)
    g_ref = feats @ feats.T / (a * b * c * d)
    tfeats = target_feature.reshape(a * b, c * d)
    t_ref = tfeats @ tfeats.T / (a * b * c * d)
    loss_ref = jnp.mean((g_ref - t_ref) ** 2)

    assert out.shape == x.shape
    assert jnp.allclose(out, x)
    assert jnp.allclose(loss, loss_ref, rtol=1e-5, atol=1e-6)

    # Exercise the multi-step + ragged last-K-tile masked path (N=150, tk=128).
    a2, b2, c2, d2 = 1, 3, 10, 15
    xf = jax.random.normal(key, (a2, b2, c2, d2), dtype=jnp.float32)
    f2 = xf.reshape(a2 * b2, c2 * d2)
    g2_ref = f2 @ f2.T / (a2 * b2 * c2 * d2)
    g2 = jax.block_until_ready(gram_matrix(xf, max_tk=128))
    assert jnp.allclose(g2, g2_ref, rtol=1e-5, atol=1e-6)
    l2 = jax.block_until_ready(style_loss(xf, g2_ref.astype(jnp.float32), max_tk=128))
    assert jnp.allclose(l2, 0.0, atol=1e-6)

    # Smoke-test the native-bf16 streaming path (f32 accumulate on the MXU).
    gb = jax.block_until_ready(gram_matrix(x.astype(jnp.bfloat16)))
    assert jnp.allclose(gb, g_ref, rtol=5e-2, atol=5e-2)

    print("KERNEL_OK")
</pallas_src>

<mosaic_0001>
module attributes {stable_mosaic.version = 11 : i64} {
  func.func @_gram_kernel(%arg0: i32, %arg1: memref<8x256xf32, #tpu.memory_space<vmem>>, %arg2: memref<8x8xf32, #tpu.memory_space<vmem>>) attributes {dimension_semantics = [#tpu.dimension_semantics<arbitrary>], iteration_bounds = array<i64: 1>, scalar_prefetch = 0 : i64, scratch_operands = 0 : i64, tpu.core_type = #tpu.core_type<tc>, window_params = [{transform_indices = @transform_0, window_bounds = array<i64: 8, 256>}, {pipeline_mode = #tpu.pipeline_mode<synchronous>, transform_indices = @transform_1, window_bounds = array<i64: 8, 8>}]} {
    %c0_i32 = arith.constant 0 : i32
    %0 = arith.cmpi eq, %arg0, %c0_i32 : i32
    %1 = arith.extui %0 : i1 to i32
    %c0_i32_0 = arith.constant 0 : i32
    %2 = arith.cmpi ne, %1, %c0_i32_0 : i32
    scf.if %2 {
      %cst_8 = arith.constant 0.000000e+00 : f32
      %11 = vector.broadcast %cst_8 : f32 to vector<8x8xf32>
      %c0_9 = arith.constant 0 : index
      %c0_10 = arith.constant 0 : index
      %12 = vector.load %arg2[%c0_9, %c0_10] : memref<8x8xf32, #tpu.memory_space<vmem>>, vector<8x8xf32>
      tpu.vector_store %arg2[%c0_9, %c0_10], %11 {strides = array<i32>} : memref<8x8xf32, #tpu.memory_space<vmem>>, vector<8x8xf32>,
    } else {
    }
    %c0 = arith.constant 0 : index
    %c0_1 = arith.constant 0 : index
    %3 = vector.load %arg1[%c0, %c0_1] : memref<8x256xf32, #tpu.memory_space<vmem>>, vector<8x256xf32>
    %c0_2 = arith.constant 0 : index
    %c0_3 = arith.constant 0 : index
    %4 = vector.load %arg2[%c0_2, %c0_3] : memref<8x8xf32, #tpu.memory_space<vmem>>, vector<8x8xf32>
    %cst = arith.constant dense<0.000000e+00> : vector<8x8xf32>
    %5 = tpu.matmul %3, %3, %cst {dimension_numbers = #tpu.dot_dimension_numbers<[1], [1], [0], [0], [0, 0, 1, 0], [], []>} : vector<8x256xf32>, vector<8x256xf32>, vector<8x8xf32> -> vector<8x8xf32>
    %6 = arith.addf %4, %5 : vector<8x8xf32>
    %c0_4 = arith.constant 0 : index
    %c0_5 = arith.constant 0 : index
    %7 = vector.load %arg2[%c0_4, %c0_5] : memref<8x8xf32, #tpu.memory_space<vmem>>, vector<8x8xf32>
    tpu.vector_store %arg2[%c0_4, %c0_5], %6 {strides = array<i32>} : memref<8x8xf32, #tpu.memory_space<vmem>>, vector<8x8xf32>,
    %c0_i32_6 = arith.constant 0 : i32
    %8 = arith.cmpi eq, %arg0, %c0_i32_6 : i32
    %9 = arith.extui %8 : i1 to i32
    %c0_i32_7 = arith.constant 0 : i32
    %10 = arith.cmpi ne, %9, %c0_i32_7 : i32
    scf.if %10 {
      %c0_8 = arith.constant 0 : index
      %c0_9 = arith.constant 0 : index
      %11 = vector.load %arg2[%c0_8, %c0_9] : memref<8x8xf32, #tpu.memory_space<vmem>>, vector<8x8xf32>
      %cst_10 = arith.constant 4.8828125E-4 : f32
      %12 = vector.broadcast %cst_10 : f32 to vector<8x8xf32>
      %13 = arith.mulf %11, %12 : vector<8x8xf32>
      %c0_11 = arith.constant 0 : index
      %c0_12 = arith.constant 0 : index
      %14 = vector.load %arg2[%c0_11, %c0_12] : memref<8x8xf32, #tpu.memory_space<vmem>>, vector<8x8xf32>
      tpu.vector_store %arg2[%c0_11, %c0_12], %13 {strides = array<i32>} : memref<8x8xf32, #tpu.memory_space<vmem>>, vector<8x8xf32>,
    } else {
    }
    return
  }
  func.func @transform_0(%arg0: i32) -> (i32, i32) {
    %c0_i32 = arith.constant 0 : i32
    %c0_i32_0 = arith.constant 0 : i32
    return %c0_i32, %arg0 : i32, i32
  }
  func.func @transform_1(%arg0: i32) -> (i32, i32) {
    %c0_i32 = arith.constant 0 : i32
    %c0_i32_0 = arith.constant 0 : i32
    %c0_i32_1 = arith.constant 0 : i32
    return %c0_i32, %c0_i32_0 : i32, i32
  }
}

</mosaic_0001>

<bundles_post_ra>
// kernel: tpu_custom_call.1
= control target key start
LH: loop header
LB: loop body
LE: loop exit
PB: predicated region body
PF: predicated region fallthrough
CT: control target
= control target key end

     0   :  { %6 = vsyncpa [#allocation3], 0  ;;  %s215_s0 = inlined_call_operand.hbm [shape: f32[8,256], index: 0, kind: input, shape index: {}]   ;;  %s216_s1 = inlined_call_operand.hbm [shape: f32[8,8], index: 1, kind: output, shape index: {}]  }
   0x1   :  { %7 = vsyncpa [#allocation4], 0  ;;  %s175_s6 = smov [#allocation2]   ;;  %s127_s10 = scalar_lea.hbm %s215_s0, 256 }
   0x2   :  { %s14_s7 = sshll.u32 %s175_s6, 4  ;;  %p128_p0 = scmp.ne.s32.totalorder %s215_s0, %s127_s10  ;;  %s15_s7 = int_to_ptr.vmem [resolvable:$true] %s14_s7 }
   0x3   :  { %p131_p1 = scmp.lt.u32.totalorder %s127_s10, %s215_s0 }
   0x5   :  { %p133_p2 = pnand %p131_p1, %p128_p0 }
   0x7   :  { %136 = shalt.err (!%p133_p2)
}
   0x8   :  { %s137_s15 = scalar_lea.vmem %s15_s7, 256  ;;  %p142_p4 = scmp.lt.s32.totalorder %s15_s7, %s15_s7 }
   0x9   :  { %p138_p3 = scmp.ne.s32.totalorder %s15_s7, %s137_s15  ;;  %p143_p5 = scmp.lt.s32.totalorder %s137_s15, %s137_s15 }
   0xb   :  { %p144_p6 = por %p143_p5, %p142_p4 }
   0xd   :  { %p145_p7 = pnand %p144_p6, %p138_p3 }
   0xf   :  { %148 = shalt.err (!%p145_p7)
}
  0x10   :  { %17 = dma.hbm_to_vmem [thread:$0]  %s215_s0, 256, %s15_s7, [#allocation3]  }
  0x11   :  { %171 = dma.done.wait [#allocation3], 256  }
  0x12   :  { %172 = vsyncadd [#allocation3], 4294967040  ;;  %vm25_vm0 = vcmask 64512   ;;  %v176_v0 = vmov 0.0   ;;  %v28_v1 = vld [vmem:[#allocation2 + $0x8] sm:$0xff]  ;;  %v27_v2 = vld [vmem:[#allocation2] sm:$0xff] }
  0x13   :  { %26 = vst.msk [vmem:[#allocation5] sm:$0xff] %vm25_vm0, %v176_v0  ;;  %30 = vmatprep.subr.mxu0 %v28_v1  ;;  %94 = vmatprep.mubr.f32.mxu0 %v28_v1  ;;  %s177_s18 = smov [#allocation5]  }
  0x14   :  { %31 = vmatpush1.xpose.msra.mxu0 %v27_v2  ;;  %s115_s0 = sshll.u32 %s177_s18, 4  ;;  %s116_s0 = int_to_ptr.vmem [resolvable:$true] %s115_s0 }
  0x15   :  { %s149_s19 = scalar_lea.vmem %s116_s0, 128  ;;  %p154_p9 = scmp.lt.s32.totalorder %s116_s0, %s116_s0 }
  0x16   :  { %p150_p8 = scmp.ne.s32.totalorder %s116_s0, %s149_s19  ;;  %p155_p10 = scmp.lt.s32.totalorder %s149_s19, %s149_s19 }
  0x17   :  { %95 = vmatmul.mubr.f32.vlgmr.msra.gmra.mrb[0].mxu0 %v27_v2 }
  0x18   :  { %p156_p11 = por %p155_p10, %p154_p9 }
  0x1a   :  { %v29_v3 = vld [vmem:[#allocation5] sm:$0xff]  ;;  %p157_p12 = pnand %p156_p11, %p150_p8 }
  0xea   :  { %v96_v4 = vpop.f32.mrb[0].mxu0 }
  0xeb   :  { %v100_v5 = vadd.f32 %v96_v4, %v29_v3  ;;  %v98_v6 = vpop.f32.mrb[1].mxu0 }
  0xed   :  { %102 = vst.msk [vmem:[#allocation5] sm:$0xff] %vm25_vm0, %v100_v5 }
  0xf4   :  { %v106_v7 = vld [vmem:[#allocation5] sm:$0xff] }
  0xf5   :  { %v107_v8 = vmul.f32 0.00048828125, %v106_v7 }
  0xf7   :  { %108 = vst.msk [vmem:[#allocation5] sm:$0xff] %vm25_vm0, %v107_v8 }
  0xf8   :  { %160 = shalt.err (!%p157_p12)
}
  0xf9   :  { %s161_s22 = scalar_lea.hbm %s216_s1, 128 }
  0xfa   :  { %p162_p13 = scmp.ne.s32.totalorder %s216_s1, %s161_s22  ;;  %p165_p0 = scmp.lt.u32.totalorder %s161_s22, %s216_s1 }
  0xfc   :  { %p167_p1 = pnand %p165_p0, %p162_p13 }
  0xfe   :  { %170 = shalt.err (!%p167_p1)
}
  0xff   :  { %118 = dma.vmem_to_hbm [thread:$0]  %s116_s0, 128, %s216_s1, [#allocation4]  }
 0x100   :  { %173 = dma.done.wait [#allocation4], 128  }
 0x101   :  { %174 = vsyncadd [#allocation4], 4294967168 }
 0x102   :  { %122 = vsyncpa [#allocation3], 1 }
 0x103   :  { %123 = vsyncpa [#allocation4], 1 }

</bundles_post_ra>
